<compile_context>
chip_gen: v6e
topology: v6e:2x2x1
jax: 0.10.0
libtpu: 0.0.40
codegen_flags: <defaults>
</compile_context>

<pallas_src>
import jax
import jax.numpy as jnp
from jax.experimental import pallas as pl
from jax.experimental.pallas import tpu as pltpu


def _round_up(x, m):
    return ((x + m - 1) // m) * m


def _patch_embed_matmul_kernel(p_ref, w_ref, b_ref, o_ref):
    # p_ref: (1, K, t_hw) bf16   w_ref: (E, K) bf16   b_ref: (E, 1) f32
    # o_ref: (1, E, t_hw) out_dtype
    # out = W @ P  (plain matmul, no transposed operand), f32 accumulate.
    acc = jax.lax.dot_general(
        w_ref[...], p_ref[0],
        dimension_numbers=(((1,), (0,)), ((), ())),
        preferred_element_type=jnp.float32)              # (E, t_hw) f32
    o_ref[0] = (acc + b_ref[...]).astype(o_ref.dtype)


def patch_embed_forward(x, weight, bias, *, patch_size=4, kernel_size=None,
                        compute_dtype=jnp.bfloat16, out_dtype=None):
    """Semantics of PatchEmbed.forward: Conv2d(in_chans, embed_dim,
    kernel_size, stride=patch_size, padding=(k-p+1)//2, padding_mode='reflect')
    on NCHW input, NCHW output."""
    if kernel_size is None:
        kernel_size = patch_size
    k, p = kernel_size, patch_size
    B, C, H, W = x.shape
    E = weight.shape[0]
    if out_dtype is None:
        out_dtype = x.dtype          # module returns the activation dtype

    pad = (k - p + 1) // 2
    if pad > 0:
        x = jnp.pad(x, ((0, 0), (0, 0), (pad, pad), (pad, pad)), mode="reflect")
    Hp, Wp = H + 2 * pad, W + 2 * pad
    Hout = (Hp - k) // p + 1
    Wout = (Wp - k) // p + 1
    HW = Hout * Wout
    K = C * k * k

    xc = x.astype(compute_dtype)
    if k == p and pad == 0 and Hp == Hout * p and Wp == Wout * p:
        # Non-overlapping patches: im2col is a single reshape + transpose,
        # produced directly in (B, K, HW) orientation (K order = (C, ki, kj)).
        patches = xc.reshape(B, C, Hout, p, Wout, p)
        patches = patches.transpose(0, 1, 3, 5, 2, 4)        # (B,C,ki,kj,Ho,Wo)
    else:
        # General (overlapping / padded) case: gather the k*k taps.
        cols = []
        for ki in range(k):
            for kj in range(k):
                cols.append(xc[:, :, ki:ki + p * Hout:p, kj:kj + p * Wout:p])
        patches = jnp.stack(cols, axis=2)                    # (B,C,k*k,Ho,Wo)
    patches = patches.reshape(B, K, HW)                      # (B, K, Ho*Wo)

    w2 = weight.reshape(E, K).astype(compute_dtype)          # (E, K)
    b2 = bias.reshape(E, 1).astype(jnp.float32)              # (E, 1)

    # --- tile-size selection from a VMEM budget (all generations) ----------
    out_bytes = jnp.dtype(out_dtype).itemsize
    resident = E * K * 2 + E * 4                 # weight (bf16) + bias (f32)
    per_col = 2 * (K * 2) + 2 * (E * out_bytes)  # dbl-buffered patch + out col
    budget = 24 * 1024 * 1024                    # headroom under 32 MiB scoped
    max_t = max(128, min(8192, ((budget - resident) // max(per_col, 1) // 128) * 128))
    t_hw = HW if HW <= max_t else max_t
    n_hw = -(-HW // t_hw)
    # v7x has 2 TCs: make sure the "parallel" grid has >= 2 tiles when possible.
    if B * n_hw < 2 and HW >= 256:
        t_hw = max(128, _round_up(-(-HW // 2), 128))
        n_hw = -(-HW // t_hw)
    footprint = resident + per_col * t_hw
    vmem_limit = int(min(48 * 1024 * 1024,
                         max(footprint + 4 * 1024 * 1024, 16 * 1024 * 1024)))

    grid = (B, n_hw)
    out = pl.pallas_call(
        _patch_embed_matmul_kernel,
        out_shape=jax.ShapeDtypeStruct((B, E, HW), out_dtype),
        grid=grid,
        in_specs=[
            pl.BlockSpec((1, K, t_hw), lambda b, i: (b, 0, i)),  # streamed patches
            pl.BlockSpec((E, K), lambda b, i: (0, 0)),           # resident weight
            pl.BlockSpec((E, 1), lambda b, i: (0, 0)),           # resident bias
        ],
        out_specs=pl.BlockSpec((1, E, t_hw), lambda b, i: (b, 0, i)),
        compiler_params=pltpu.CompilerParams(
            dimension_semantics=("parallel", "parallel"),
            vmem_limit_bytes=vmem_limit,
        ),
    )(patches, w2, b2)

    # (B, E, Ho*Wo) -> (B, E, Ho, Wo): free reshape, no transpose.
    return out.reshape(B, E, Hout, Wout)


def init_patch_embed_params(key, in_chans, embed_dim, kernel_size):
    """Deterministic init mirroring nn.Conv2d default (kaiming-uniform-ish)."""
    kw, kb = jax.random.split(key)
    fan_in = in_chans * kernel_size * kernel_size
    bound = 1.0 / (fan_in ** 0.5)
    weight = jax.random.uniform(
        kw, (embed_dim, in_chans, kernel_size, kernel_size),
        minval=-bound, maxval=bound, dtype=jnp.float32)
    bias = jax.random.uniform(
        kb, (embed_dim,), minval=-bound, maxval=bound, dtype=jnp.float32)
    return weight, bias


if __name__ == "__main__":
    key = jax.random.PRNGKey(0)
    kx, kp = jax.random.split(key)

    B, C, H, W = 2, 4, 16, 16
    patch_size = 4
    embed_dim = 32
    kernel_size = patch_size          # module default => padding 0

    x = jax.random.normal(kx, (B, C, H, W), dtype=jnp.float32)
    weight, bias = init_patch_embed_params(kp, C, embed_dim, kernel_size)

    y = patch_embed_forward(x, weight, bias,
                            patch_size=patch_size, kernel_size=kernel_size)
    y = jax.block_until_ready(y)
    assert y.shape == (B, embed_dim, H // patch_size, W // patch_size), y.shape

    # Cross-check against XLA's conv (bf16 MXU inputs => loose tolerance).
    y_ref = jax.lax.conv_general_dilated(
        x, weight, window_strides=(patch_size, patch_size), padding="VALID",
        dimension_numbers=("NCHW", "OIHW", "NCHW"),
    ) + bias.reshape(1, -1, 1, 1)
    err = float(jnp.max(jnp.abs(y.astype(jnp.float32) - y_ref)))
    assert err < 5e-2, f"max abs err {err}"

    print("KERNEL_OK")
</pallas_src>

<mosaic_0001>
module attributes {stable_mosaic.version = 11 : i64} {
  func.func @_patch_embed_matmul_kernel(%arg0: i32, %arg1: i32, %arg2: memref<1x64x16xbf16, #tpu.memory_space<vmem>>, %arg3: memref<32x64xbf16, #tpu.memory_space<vmem>>, %arg4: memref<32x1xf32, #tpu.memory_space<vmem>>, %arg5: memref<1x32x16xf32, #tpu.memory_space<vmem>>) attributes {dimension_semantics = [#tpu.dimension_semantics<parallel>, #tpu.dimension_semantics<parallel>], iteration_bounds = array<i64: 2, 1>, scalar_prefetch = 0 : i64, scratch_operands = 0 : i64, tpu.core_type = #tpu.core_type<tc>, window_params = [{transform_indices = @transform_0, window_bounds = array<i64: 1, 64, 16>}, {pipeline_mode = #tpu.pipeline_mode<synchronous>, transform_indices = @transform_1, window_bounds = array<i64: 32, 64>}, {pipeline_mode = #tpu.pipeline_mode<synchronous>, transform_indices = @transform_2, window_bounds = array<i64: 32, 1>}, {transform_indices = @transform_3, window_bounds = array<i64: 1, 32, 16>}]} {
    %c0 = arith.constant 0 : index
    %c0_0 = arith.constant 0 : index
    %0 = vector.load %arg3[%c0, %c0_0] : memref<32x64xbf16, #tpu.memory_space<vmem>>, vector<32x64xbf16>
    %c0_1 = arith.constant 0 : index
    %c0_2 = arith.constant 0 : index
    %c0_3 = arith.constant 0 : index
    %1 = vector.load %arg2[%c0_1, %c0_2, %c0_3] : memref<1x64x16xbf16, #tpu.memory_space<vmem>>, vector<1x64x16xbf16>
    %2 = vector.shape_cast %1 : vector<1x64x16xbf16> to vector<64x16xbf16>
    %cst = arith.constant dense<0.000000e+00> : vector<32x16xf32>
    %3 = tpu.matmul %0, %2, %cst {dimension_numbers = #tpu.dot_dimension_numbers<[1], [0], [0], [1], [0, 0, 1, 1], [], []>} : vector<32x64xbf16>, vector<64x16xbf16>, vector<32x16xf32> -> vector<32x16xf32>
    %c0_4 = arith.constant 0 : index
    %c0_5 = arith.constant 0 : index
    %4 = vector.load %arg4[%c0_4, %c0_5] : memref<32x1xf32, #tpu.memory_space<vmem>>, vector<32x1xf32>
    %5 = vector.broadcast %4 : vector<32x1xf32> to vector<32x16xf32>
    %6 = arith.addf %3, %5 : vector<32x16xf32>
    %c0_6 = arith.constant 0 : index
    %c0_7 = arith.constant 0 : index
    %c0_8 = arith.constant 0 : index
    %7 = vector.load %arg5[%c0_6, %c0_7, %c0_8] : memref<1x32x16xf32, #tpu.memory_space<vmem>>, vector<1x32x16xf32>
    %8 = vector.shape_cast %7 : vector<1x32x16xf32> to vector<32x16xf32>
    %9 = vector.shape_cast %6 : vector<32x16xf32> to vector<1x32x16xf32>
    tpu.vector_store %arg5[%c0_6, %c0_7, %c0_8], %9 {strides = array<i32>} : memref<1x32x16xf32, #tpu.memory_space<vmem>>, vector<1x32x16xf32>,
    return
  }
  func.func @transform_0(%arg0: i32, %arg1: i32) -> (i32, i32, i32) {
    %c0_i32 = arith.constant 0 : i32
    %c0_i32_0 = arith.constant 0 : i32
    return %arg0, %c0_i32, %arg1 : i32, i32, i32
  }
  func.func @transform_1(%arg0: i32, %arg1: i32) -> (i32, i32) {
    %c0_i32 = arith.constant 0 : i32
    %c0_i32_0 = arith.constant 0 : i32
    %c0_i32_1 = arith.constant 0 : i32
    return %c0_i32, %c0_i32_0 : i32, i32
  }
  func.func @transform_2(%arg0: i32, %arg1: i32) -> (i32, i32) {
    %c0_i32 = arith.constant 0 : i32
    %c0_i32_0 = arith.constant 0 : i32
    %c0_i32_1 = arith.constant 0 : i32
    return %c0_i32, %c0_i32_0 : i32, i32
  }
  func.func @transform_3(%arg0: i32, %arg1: i32) -> (i32, i32, i32) {
    %c0_i32 = arith.constant 0 : i32
    %c0_i32_0 = arith.constant 0 : i32
    return %arg0, %c0_i32, %arg1 : i32, i32, i32
  }
}

</mosaic_0001>

<bundles_post_ra>
// kernel: tpu_custom_call.1
= control target key start
LH: loop header
LB: loop body
LE: loop exit
PB: predicated region body
PF: predicated region fallthrough
CT: control target
= control target key end

     0   :  { %s534_s12 = smov 0   ;;  %s536_s13 = smov 0   ;;  %s590_s0 = inlined_call_operand.vmem [shape: bf16[2,64,16], index: 0, kind: input, shape index: {}]   ;;  %s591_s1 = inlined_call_operand.vmem [shape: bf16[32,64], index: 1, kind: input, shape index: {}]   ;;  %s592_s2 = inlined_call_operand.vmem [shape: f32[32,1], index: 2, kind: input, shape index: {}]   ;;  %s593_s3 = inlined_call_operand.vmem [shape: f32[2,32,16], index: 3, kind: output, shape index: {}]  }
   0x1   :  { %s538_s14 = smov 0  }
   0x2 LB: > { %s25_s15 = sadd.s32 1, %s507_s13  ;;  %p421_p0 = scmp.ge.s32.totalorder %s511_s14, 1  ;;  %s511_s14 = sphi %s538_s14, %s13_s14   ;;  %s507_s13 = sphi %s536_s13, %s595_s13   ;;  %s503_s12 = sphi %s534_s12, %s594_s12  }
   0x3   : > { %p27_p1 = scmp.ge.s32.totalorder %s25_s15, 2  ;;  %p156_p2 = scmp.lt.s32.totalorder %s511_s14, 3 }
   0x5   : > { %s597_s15 = smov (%p27_p1, %s25_s15), 0  ;;  %p157_p3 = pnand %p421_p0, %p156_p2 }
   0x6   : > { %p186_p4 = scmp.lt.s32.totalorder (!%p157_p3), %s503_s12, 1 }
   0x7   : > { %160 = sbr.rel (%p157_p3) target bundleno = 234 (0xea), region = 32 }
   0xc   : > { %v487_v0 = vld [vmem:[%s591_s1] sm:$0xff]   ;;  %vm273_vm0 = vcmask 523264   ;;  %s599_s12 = smov (!%p186_p4, %s503_s12), 1  ;;  %v217_v1 = vld [vmem:[%s592_s2 + $0x10] sm:$0xff]  ;;  %v513_v3 = vmov 0   ;;  %v218_v4 = vld [vmem:[%s592_s2 + $0x18] sm:$0xff] }
   0xd   : > { %452 = vmatprep.mubr.msk.bf16.mxu0 %vm273_vm0, %v487_v0  ;;  %v215_v2 = vld [vmem:[%s592_s2] sm:$0xff]  ;;  %482 = vset.pattern.permute.xlu1 %v513_v3  ;;  %s436_s22 = sshll.u32 %s599_s12, 5  ;;  %v216_v5 = vld [vmem:[%s592_s2 + $0x8] sm:$0xff]  ;;  %vm329_vm1 = vcmask 130048  }
   0xe   : > { %481 = vset.pattern.permute.xlu0 %v513_v3  ;;  %231 = vperm.xlu1 %482, %v217_v1   ;;  %s193_s25 = scalar_lea.vmem %s590_s0, %s436_s22  ;;  %v488_v10 = vld [vmem:[%s591_s1 + $0x8] sm:$0xff]   ;;  %s201_s7 = scalar_lea.vmem %s593_s3, %s436_s22 }
   0xf   : > { %221 = vperm.xlu0 %481, %v215_v2   ;;  %v483_v6 = vld [vmem:[%s193_s25 + $0x18] sm:$0xff]   ;;  %v484_v7 = vld [vmem:[%s193_s25 + $0x10] sm:$0xff]   ;;  %v485_v8 = vld [vmem:[%s193_s25 + $0x8] sm:$0xff]  }
  0x10   : > { %444 = vmatprep.subr.bf16.mxu0 %v483_v6  ;;  %v486_v9 = vld [vmem:[%s193_s25] sm:$0xff]  }
  0x11   : > { %445 = vmatpush3.bf16.msra.mxu0 %v483_v6 }
  0x12   : > { %236 = vperm.xlu1 %482, %v218_v4   ;;  %446 = vmatprep.subr.bf16.mxu0 %v484_v7 }
  0x13   : > { %226 = vperm.xlu0 %481, %v216_v5  }
  0x15   : > { %447 = vmatpush3.bf16.msra.mxu0 %v484_v7 }
  0x16   : > { %448 = vmatprep.subr.bf16.mxu0 %v485_v8 }
  0x19   : > { %449 = vmatpush3.bf16.msra.mxu0 %v485_v8 }
  0x1a   : > { %450 = vmatprep.subr.bf16.mxu0 %v486_v9 }
  0x1d   : > { %451 = vmatpush3.bf16.msra.mxu0 %v486_v9 }
  0x20   : > { %453 = vmatmul.mubr.msk.bf16.vlgmr.msra.gmra.mxu0 %vm273_vm0, %v488_v10 }
  0x89   : > { %v232_v11 = vpop.permute.xlu1 %231 }
  0x8a   : > { %v222_v12 = vpop.permute.xlu0 %221 }
  0x8d   : > { %v237_v17 = vpop.permute.xlu1 %236 }
  0x8e   : > { %v227_v20 = vpop.permute.xlu0 %226 }
  0xe0   : > { %v454_v13 = vpop.f32.mrf.mxu0 }
  0xe1   : > { %v323_v14 = vadd.f32 %v454_v13, %v232_v11 }
  0xe2   : > { %v314_v15 = vpop.f32.mrf.mxu0 }
  0xe3   : > { %332 = vst.msk [vmem:[%s201_s7 + $0x10] sm:$0xff] %vm329_vm1, %v323_v14  ;;  %v315_v16 = vadd.f32 %v314_v15, %v222_v12 }
  0xe4   : > { %v455_v18 = vpop.f32.mrf.mxu0 }
  0xe5   : > { %330 = vst.msk [vmem:[%s201_s7] sm:$0xff] %vm329_vm1, %v315_v16  ;;  %v326_v19 = vadd.f32 %v455_v18, %v237_v17 }
  0xe6   : > { %v317_v21 = vpop.f32.mrf.mxu0 }
  0xe7   : > { %333 = vst.msk [vmem:[%s201_s7 + $0x18] sm:$0xff] %vm329_vm1, %v326_v19  ;;  %v318_v22 = vadd.f32 %v317_v21, %v227_v20 }
  0xe9   : > { %331 = vst.msk [vmem:[%s201_s7 + $0x8] sm:$0xff] %vm329_vm1, %v318_v22 }
  0xea PF: > { %s13_s14 = sadd.s32 1, %s511_s14   ;;  %s594_s12 = smov %s507_s13 }
  0xeb   : > { %p10_p5 = scmp.ge.s32.totalorder %s13_s14, 4   ;;  %s595_s13 = smov %s597_s15 }
  0xed   :  { %12 = sbr.rel (!%p10_p5) target bundleno = 2 (0x2), region = 62 }

</bundles_post_ra>
